<compile_context>
chip_gen: v5e
topology: v5e:2x2
jax: 0.10.0
libtpu: 0.0.40
codegen_flags: <defaults>
</compile_context>

<pallas_src>
import functools

import jax
import jax.numpy as jnp
from jax.experimental import pallas as pl
from jax.experimental.pallas import tpu as pltpu


def _combination_kernel(x1_ref, x2_ref, w1_ref, w2_ref, wc_ref, bias_ref, o_ref):
    # Agents: two dots into one shared 8-wide f32 accumulator.
    #   cols 0:3 = h1, cols 3:6 = h2, cols 6:8 stay exactly 0.
    h = jnp.dot(x1_ref[...], w1_ref[...], preferred_element_type=jnp.float32)
    h = h + jnp.dot(x2_ref[...], w2_ref[...], preferred_element_type=jnp.float32)
    # relu(cat(h1, h2) + [b1 || b2]); padded cols stay 0 through the relu.
    h = jnp.maximum(h + bias_ref[0:1, :], 0.0)                     # (tb, 8)
    # Classifier Linear(6, 3); wc padded to (8, 3) with zero rows 6:8.
    out = jnp.dot(h, wc_ref[...], preferred_element_type=jnp.float32)
    o_ref[...] = (out + bias_ref[1:2, 0:3]).astype(o_ref.dtype)    # (tb, 3)


def _round_up(x, m):
    return ((x + m - 1) // m) * m


@functools.partial(jax.jit, static_argnames=("tile_b",))
def combination_forward(x1, x2, params, *, tile_b=8192):
    """params: w1 (D1,3), b1 (1,3), w2 (D2,3), b2 (1,3),
    wc (6,3) [= torch Linear(6,3).weight.T], bc (1,3)."""
    B, D1 = x1.shape
    D2 = x2.shape[1]
    x1 = x1.astype(jnp.float32)
    x2 = x2.astype(jnp.float32)

    # ---- tiny resident parameter tiles (built once, negligible) ----------
    w1p = jnp.zeros((D1, 8), jnp.float32).at[:, 0:3].set(
        params["w1"].astype(jnp.float32))
    w2p = jnp.zeros((D2, 8), jnp.float32).at[:, 3:6].set(
        params["w2"].astype(jnp.float32))
    wcp = jnp.zeros((8, 3), jnp.float32).at[0:6, :].set(
        params["wc"].astype(jnp.float32))
    bias = jnp.zeros((2, 8), jnp.float32)
    bias = bias.at[0, 0:3].set(params["b1"].reshape(3))
    bias = bias.at[0, 3:6].set(params["b2"].reshape(3))
    bias = bias.at[1, 0:3].set(params["bc"].reshape(3))

    # ---- batch tiling -----------------------------------------------------
    # Small B: single block (block dims == array dims is always legal).
    # Large B: big tiles (multiple of 128) to amortize per-step overhead, but
    # capped so the grid has >= 2 parallel steps (v7x has 2 TensorCores) and
    # at 16K rows so the lane-padded output buffers stay well inside VMEM.
    tile_b = min(int(tile_b), 16384)
    if B <= 128:
        tb = B
    else:
        tb = min(tile_b, _round_up(pl.cdiv(B, 2), 128))
    grid = (pl.cdiv(B, tb),)

    return pl.pallas_call(
        _combination_kernel,
        out_shape=jax.ShapeDtypeStruct((B, 3), jnp.float32),
        grid=grid,
        in_specs=[
            pl.BlockSpec((tb, D1), lambda i: (i, 0)),   # streamed batch tile
            pl.BlockSpec((tb, D2), lambda i: (i, 0)),   # streamed batch tile
            pl.BlockSpec((D1, 8), lambda i: (0, 0)),    # resident weights
            pl.BlockSpec((D2, 8), lambda i: (0, 0)),
            pl.BlockSpec((8, 3), lambda i: (0, 0)),
            pl.BlockSpec((2, 8), lambda i: (0, 0)),     # packed biases
        ],
        out_specs=pl.BlockSpec((tb, 3), lambda i: (i, 0)),
        compiler_params=pltpu.CompilerParams(
            dimension_semantics=("parallel",),          # v7x: shard over 2 TCs
            vmem_limit_bytes=48 * 1024 * 1024),         # >> ~24 MiB worst case
    )(x1, x2, w1p, w2p, wcp, bias)


def _reference_f32(x1, x2, params):
    h1 = x1 @ params["w1"] + params["b1"]
    h2 = x2 @ params["w2"] + params["b2"]
    h = jnp.maximum(jnp.concatenate([h1, h2], axis=1), 0.0)
    return h @ params["wc"] + params["bc"]


def _make_params(key, D1, D2):
    ks = jax.random.split(key, 6)
    return {
        # agent1: Linear(D1, 3); stored as (in, out) so kernel does x @ W
        "w1": jax.random.normal(ks[0], (D1, 3), jnp.float32) * (1.0 / jnp.sqrt(D1)),
        "b1": jax.random.normal(ks[1], (1, 3), jnp.float32) * 0.1,
        # agent2: Linear(D2, 3)
        "w2": jax.random.normal(ks[2], (D2, 3), jnp.float32) * (1.0 / jnp.sqrt(D2)),
        "b2": jax.random.normal(ks[3], (1, 3), jnp.float32) * 0.1,
        # classifier: Linear(6, 3) (torch weight (3,6) -> stored transposed (6,3))
        "wc": jax.random.normal(ks[4], (6, 3), jnp.float32) * (1.0 / jnp.sqrt(6.0)),
        "bc": jax.random.normal(ks[5], (1, 3), jnp.float32) * 0.1,
    }


if __name__ == "__main__":
    key = jax.random.PRNGKey(0)
    kx1, kx2, kx3, kx4, kp = jax.random.split(key, 5)

    # ---- small-shape check (single-block path) ---------------------------
    B, D1, D2 = 8, 16, 16
    params = _make_params(kp, D1, D2)
    x1 = jax.random.normal(kx1, (B, D1), jnp.float32)
    x2 = jax.random.normal(kx2, (B, D2), jnp.float32)

    out = jax.block_until_ready(combination_forward(x1, x2, params))
    assert out.shape == (B, 3)
    ref = _reference_f32(x1, x2, params)
    assert jnp.allclose(out, ref, atol=2e-2, rtol=2e-2), (
        float(jnp.max(jnp.abs(out - ref))))

    # ---- multi-step / partial-tail path (grid of 2 "parallel" steps) -----
    Bl = 500
    x1l = jax.random.normal(kx3, (Bl, D1), jnp.float32)
    x2l = jax.random.normal(kx4, (Bl, D2), jnp.float32)
    outl = jax.block_until_ready(combination_forward(x1l, x2l, params))
    assert outl.shape == (Bl, 3)
    refl = _reference_f32(x1l, x2l, params)
    assert jnp.allclose(outl, refl, atol=2e-2, rtol=2e-2), (
        float(jnp.max(jnp.abs(outl - refl))))

    print("KERNEL_OK")
</pallas_src>

<mosaic_0001>
module attributes {stable_mosaic.version = 11 : i64} {
  func.func @_combination_kernel(%arg0: i32, %arg1: memref<8x16xf32, #tpu.memory_space<vmem>>, %arg2: memref<8x16xf32, #tpu.memory_space<vmem>>, %arg3: memref<16x8xf32, #tpu.memory_space<vmem>>, %arg4: memref<16x8xf32, #tpu.memory_space<vmem>>, %arg5: memref<8x3xf32, #tpu.memory_space<vmem>>, %arg6: memref<2x8xf32, #tpu.memory_space<vmem>>, %arg7: memref<8x3xf32, #tpu.memory_space<vmem>>) attributes {dimension_semantics = [#tpu.dimension_semantics<parallel>], iteration_bounds = array<i64: 1>, scalar_prefetch = 0 : i64, scratch_operands = 0 : i64, tpu.core_type = #tpu.core_type<tc>, window_params = [{transform_indices = @transform_0, window_bounds = array<i64: 8, 16>}, {transform_indices = @transform_1, window_bounds = array<i64: 8, 16>}, {pipeline_mode = #tpu.pipeline_mode<synchronous>, transform_indices = @transform_2, window_bounds = array<i64: 16, 8>}, {pipeline_mode = #tpu.pipeline_mode<synchronous>, transform_indices = @transform_3, window_bounds = array<i64: 16, 8>}, {pipeline_mode = #tpu.pipeline_mode<synchronous>, transform_indices = @transform_4, window_bounds = array<i64: 8, 3>}, {pipeline_mode = #tpu.pipeline_mode<synchronous>, transform_indices = @transform_5, window_bounds = array<i64: 2, 8>}, {transform_indices = @transform_6, window_bounds = array<i64: 8, 3>}]} {
    %c0 = arith.constant 0 : index
    %c0_0 = arith.constant 0 : index
    %0 = vector.load %arg1[%c0, %c0_0] : memref<8x16xf32, #tpu.memory_space<vmem>>, vector<8x16xf32>
    %c0_1 = arith.constant 0 : index
    %c0_2 = arith.constant 0 : index
    %1 = vector.load %arg3[%c0_1, %c0_2] : memref<16x8xf32, #tpu.memory_space<vmem>>, vector<16x8xf32>
    %cst = arith.constant dense<0.000000e+00> : vector<8x8xf32>
    %2 = tpu.matmul %0, %1, %cst {dimension_numbers = #tpu.dot_dimension_numbers<[1], [0], [0], [1], [0, 0, 1, 1], [], []>} : vector<8x16xf32>, vector<16x8xf32>, vector<8x8xf32> -> vector<8x8xf32>
    %c0_3 = arith.constant 0 : index
    %c0_4 = arith.constant 0 : index
    %3 = vector.load %arg2[%c0_3, %c0_4] : memref<8x16xf32, #tpu.memory_space<vmem>>, vector<8x16xf32>
    %c0_5 = arith.constant 0 : index
    %c0_6 = arith.constant 0 : index
    %4 = vector.load %arg4[%c0_5, %c0_6] : memref<16x8xf32, #tpu.memory_space<vmem>>, vector<16x8xf32>
    %cst_7 = arith.constant dense<0.000000e+00> : vector<8x8xf32>
    %5 = tpu.matmul %3, %4, %cst_7 {dimension_numbers = #tpu.dot_dimension_numbers<[1], [0], [0], [1], [0, 0, 1, 1], [], []>} : vector<8x16xf32>, vector<16x8xf32>, vector<8x8xf32> -> vector<8x8xf32>
    %6 = arith.addf %2, %5 : vector<8x8xf32>
    %c0_8 = arith.constant 0 : index
    %c0_9 = arith.constant 0 : index
    %7 = vector.load %arg6[%c0_8, %c0_9] : memref<2x8xf32, #tpu.memory_space<vmem>>, vector<1x8xf32>
    %8 = vector.broadcast %7 : vector<1x8xf32> to vector<8x8xf32>
    %9 = arith.addf %6, %8 : vector<8x8xf32>
    %cst_10 = arith.constant 0.000000e+00 : f32
    %10 = vector.broadcast %cst_10 : f32 to vector<8x8xf32>
    %11 = arith.maximumf %9, %10 : vector<8x8xf32>
    %c0_11 = arith.constant 0 : index
    %c0_12 = arith.constant 0 : index
    %12 = vector.load %arg5[%c0_11, %c0_12] : memref<8x3xf32, #tpu.memory_space<vmem>>, vector<8x3xf32>
    %cst_13 = arith.constant dense<0.000000e+00> : vector<8x3xf32>
    %13 = tpu.matmul %11, %12, %cst_13 {dimension_numbers = #tpu.dot_dimension_numbers<[1], [0], [0], [1], [0, 0, 1, 1], [], []>} : vector<8x8xf32>, vector<8x3xf32>, vector<8x3xf32> -> vector<8x3xf32>
    %c1 = arith.constant 1 : index
    %c0_14 = arith.constant 0 : index
    %14 = vector.load %arg6[%c1, %c0_14] : memref<2x8xf32, #tpu.memory_space<vmem>>, vector<1x3xf32>
    %15 = vector.broadcast %14 : vector<1x3xf32> to vector<8x3xf32>
    %16 = arith.addf %13, %15 : vector<8x3xf32>
    %c0_15 = arith.constant 0 : index
    %c0_16 = arith.constant 0 : index
    %17 = vector.load %arg7[%c0_15, %c0_16] : memref<8x3xf32, #tpu.memory_space<vmem>>, vector<8x3xf32>
    tpu.vector_store %arg7[%c0_15, %c0_16], %16 {strides = array<i32>} : memref<8x3xf32, #tpu.memory_space<vmem>>, vector<8x3xf32>,
    return
  }
  func.func @transform_0(%arg0: i32) -> (i32, i32) {
    %c0_i32 = arith.constant 0 : i32
    %c0_i32_0 = arith.constant 0 : i32
    return %arg0, %c0_i32 : i32, i32
  }
  func.func @transform_1(%arg0: i32) -> (i32, i32) {
    %c0_i32 = arith.constant 0 : i32
    %c0_i32_0 = arith.constant 0 : i32
    return %arg0, %c0_i32 : i32, i32
  }
  func.func @transform_2(%arg0: i32) -> (i32, i32) {
    %c0_i32 = arith.constant 0 : i32
    %c0_i32_0 = arith.constant 0 : i32
    %c0_i32_1 = arith.constant 0 : i32
    return %c0_i32, %c0_i32_0 : i32, i32
  }
  func.func @transform_3(%arg0: i32) -> (i32, i32) {
    %c0_i32 = arith.constant 0 : i32
    %c0_i32_0 = arith.constant 0 : i32
    %c0_i32_1 = arith.constant 0 : i32
    return %c0_i32, %c0_i32_0 : i32, i32
  }
  func.func @transform_4(%arg0: i32) -> (i32, i32) {
    %c0_i32 = arith.constant 0 : i32
    %c0_i32_0 = arith.constant 0 : i32
    %c0_i32_1 = arith.constant 0 : i32
    return %c0_i32, %c0_i32_0 : i32, i32
  }
  func.func @transform_5(%arg0: i32) -> (i32, i32) {
    %c0_i32 = arith.constant 0 : i32
    %c0_i32_0 = arith.constant 0 : i32
    %c0_i32_1 = arith.constant 0 : i32
    return %c0_i32, %c0_i32_0 : i32, i32
  }
  func.func @transform_6(%arg0: i32) -> (i32, i32) {
    %c0_i32 = arith.constant 0 : i32
    %c0_i32_0 = arith.constant 0 : i32
    return %arg0, %c0_i32 : i32, i32
  }
}

</mosaic_0001>

<bundles_post_ra>
// kernel: combination_forward.1
= control target key start
LH: loop header
LB: loop body
LE: loop exit
PB: predicated region body
PF: predicated region fallthrough
CT: control target
= control target key end

     0   :  { %vm29_vm0 = vcmask 130048   ;;  %vm83_vm1 = vcmask 64512   ;;  %vm107_vm2 = vcmask 23552   ;;  %s183_s3 = inlined_call_operand.vmem [shape: f32[16,8], index: 3, kind: input, shape index: {}]   ;;  %s184_s2 = inlined_call_operand.vmem [shape: f32[16,8], index: 2, kind: input, shape index: {}]   ;;  %s185_s1 = inlined_call_operand.vmem [shape: f32[8,16], index: 1, kind: input, shape index: {}]   ;;  %s186_s0 = inlined_call_operand.vmem [shape: f32[8,16], index: 0, kind: input, shape index: {}]   ;;  %s187_s5 = inlined_call_operand.vmem [shape: f32[2,8], index: 5, kind: input, shape index: {}]   ;;  %s188_s4 = inlined_call_operand.vmem [shape: f32[8,3], index: 4, kind: input, shape index: {}]   ;;  %s189_s6 = inlined_call_operand.vmem [shape: f32[8,3], index: 6, kind: output, shape index: {}]  }
   0x1   :  { %v28_v0 = vld [vmem:[%s183_s3 + $0x8] sm:$0xff]  ;;  %v27_v2 = vld [vmem:[%s183_s3] sm:$0xff] }
   0x2   :  { %v25_v1 = vld [vmem:[%s184_s2 + $0x8] sm:$0xff]  ;;  %47 = vmatpush.msra.mxu0 %v28_v0  ;;  %v24_v3 = vld [vmem:[%s184_s2] sm:$0xff] }
   0x3   :  { %70 = vmatpush.msra.mxu1 %v25_v1  ;;  %v26_v4 = vld [vmem:[%s185_s1] sm:$0xff] }
   0x4   :  { %v23_v5 = vld [vmem:[%s186_s0] sm:$0xff]  ;;  %48 = vmatpush.msra.mxu0 %v27_v2 }
   0x5   :  { %71 = vmatpush.msra.mxu1 %v24_v3  ;;  %113 = vmatmul.msk.f32.vlgmr.msra.gmra.mxu0 %vm29_vm0, %v26_v4  ;;  %v80_v6 = vld [vmem:[%s188_s4] sm:$0xff] }
   0x6   :  { %114 = vmatmul.msk.f32.vlgmr.msra.gmra.mxu1 %vm29_vm0, %v23_v5  ;;  %102 = vmatpush.msra.mxu2 %v80_v6  ;;  %v116_v7 = vld [vmem:[%s187_s5] ss:$0 sm:$0xff]  ;;  %v117_v13 = vld [vmem:[%s187_s5 + $0x1] ss:$0 sm:$0xff] }
  0x82   :  { %v50_v8 = vpop.f32.mrf.mxu0 }
  0x83   :  { %v73_v9 = vpop.f32.mrf.mxu1 }
  0x84   :  { %v74_v10 = vadd.f32 %v73_v9, %v50_v8 }
  0x86   :  { %v78_v11 = vadd.f32 %v116_v7, %v74_v10 }
  0x88   :  { %v79_v12 = vmax.f32 %v78_v11, 0.0 }
  0x8a   :  { %115 = vmatmul.msk.f32.vlgmr.msra.gmra.mxu2 %vm83_vm1, %v79_v12 }
 0x10d   :  { %v104_v14 = vpop.f32.mrf.mxu2 }
 0x10e   :  { %v105_v15 = vadd.f32 %v117_v13, %v104_v14 }
 0x110   :  { %108 = vst.msk [vmem:[%s189_s6] sm:$0xff] %vm107_vm2, %v105_v15 }

</bundles_post_ra>
